<compile_context>
chip_gen: v5e
topology: v5e:2x2
jax: 0.10.0
libtpu: 0.0.40
codegen_flags: <defaults>
</compile_context>

<pallas_src>
import functools
from typing import NamedTuple

import jax
import jax.numpy as jnp
from jax import lax
from jax.experimental import pallas as pl
from jax.experimental.pallas import tpu as pltpu


def _round_up(x, m):
    return (x + m - 1) // m * m


def _tpu_vmem_capacity():
    try:
        return int(pltpu.get_tpu_info().vmem_capacity_bytes)
    except Exception:
        return 64 << 20          # v7x-safe conservative fallback


# --------------------------------------------------------------------------
# LayerNormalization epilogue (shared by both kernel variants).
# --------------------------------------------------------------------------
def _ln_epilogue(z, ga, gb, *, eps, d_model, dm_p):
    if d_model == 1:
        # torch LayerNormalization returns z unchanged when feature dim == 1.
        return z
    # Unbiased std (ddof=1), eps added to *sigma* (NOT standard LN) — keep
    # exactly this formulation.  Padded feature columns of z are exactly zero
    # (zero-padded weights/bias/residual), so the mean sum is already correct;
    # only (z - mu) needs masking before the variance reduction.
    mu = jnp.sum(z, axis=-1, keepdims=True) * (1.0 / d_model)
    diff = z - mu
    if dm_p != d_model:
        col = lax.broadcasted_iota(jnp.int32, (1, dm_p), 1)
        diff = jnp.where(col < d_model, diff, 0.0)
    var = jnp.sum(diff * diff, axis=-1, keepdims=True) * (1.0 / (d_model - 1))
    inv_sigma = pl.reciprocal(jnp.sqrt(var) + eps, approx=False)  # hold 1e-4 acc.
    return diff * inv_sigma * ga + gb


# --------------------------------------------------------------------------
# Kernel A (default): weights fully VMEM-resident, 1-D batch grid.
# --------------------------------------------------------------------------
def _support_encoder_kernel_resident(x_ref, w1_ref, b1_ref, w2_ref, b2_ref,
                                     ga_ref, gb_ref, o_ref,
                                     *, eps, d_model, dm_p, mxu_dtype):
    x = x_ref[...]
    xm = x.astype(mxu_dtype)                              # single cast per tile
    h = jnp.dot(xm, w1_ref[...], preferred_element_type=jnp.float32)
    h = jnp.maximum(h + b1_ref[...], 0.0)
    z = jnp.dot(h.astype(mxu_dtype), w2_ref[...],
                preferred_element_type=jnp.float32)
    z = z + b2_ref[...] + x.astype(jnp.float32)           # dropout: identity (inference)
    y = _ln_epilogue(z, ga_ref[...], gb_ref[...],
                     eps=eps, d_model=d_model, dm_p=dm_p)
    o_ref[...] = y.astype(o_ref.dtype)


# --------------------------------------------------------------------------
# Kernel B (fallback for huge d_inner): d_inner tiled over an "arbitrary" k
# axis with an f32 VMEM accumulator; last partial folded into the epilogue.
# --------------------------------------------------------------------------
def _support_encoder_kernel_ktiled(x_ref, w1_ref, b1_ref, w2_ref, b2_ref,
                                   ga_ref, gb_ref, o_ref, acc_ref, *xm_scratch,
                                   eps, d_model, dm_p, mxu_dtype, cast_x):
    k = pl.program_id(1)
    last = pl.num_programs(1) - 1

    if cast_x:
        xm_ref = xm_scratch[0]

        @pl.when(k == 0)
        def _cast_once():
            xm_ref[...] = x_ref[...].astype(mxu_dtype)

        xm = xm_ref[...]
    else:
        xm = x_ref[...]

    # proj1 tile: contraction over full d_model, output columns tiled over
    # d_inner (k axis); MXU matmul with f32 accumulate, bias/ReLU in f32.
    h = jnp.dot(xm, w1_ref[...], preferred_element_type=jnp.float32)
    h = jnp.maximum(h + b1_ref[...], 0.0)

    # proj2 partial product for this k tile.
    partial = jnp.dot(h.astype(mxu_dtype), w2_ref[...],
                      preferred_element_type=jnp.float32)

    @pl.when(k == 0)
    def _init():
        acc_ref[...] = partial

    @pl.when(jnp.logical_and(k > 0, k < last))
    def _accum():
        acc_ref[...] += partial

    @pl.when(k == last)
    def _finalize():
        # Fold the last partial straight into the epilogue (no acc re-store).
        z = acc_ref[...] + partial + b2_ref[...] + x_ref[...].astype(jnp.float32)
        y = _ln_epilogue(z, ga_ref[...], gb_ref[...],
                         eps=eps, d_model=d_model, dm_p=dm_p)
        o_ref[...] = y.astype(o_ref.dtype)


# --------------------------------------------------------------------------
# Parameter preparation (done ONCE per model, not per call).
# --------------------------------------------------------------------------
class SupportEncoderParams(NamedTuple):
    w1: jax.Array       # [dm_p, di_p] mxu_dtype
    b1: jax.Array       # [1, di_p]    f32
    w2: jax.Array       # [di_p, dm_p] mxu_dtype
    b2: jax.Array       # [1, dm_p]    f32
    ln_a: jax.Array     # [1, dm_p]    f32
    ln_b: jax.Array     # [1, dm_p]    f32
    d_model: int
    d_inner: int
    dm_p: int
    di_p: int
    resident: bool
    tile_k: int
    eps: float
    mxu_dtype: jnp.dtype


def prepare_support_encoder_params(w1, b1, w2, b2, ln_a, ln_b, *, eps=1e-3,
                                   mxu_dtype=jnp.bfloat16, tile_k=512,
                                   force_k_tile=None):
    """w1: [d_model, d_inner] (already transposed), w2: [d_inner, d_model].

    mxu_dtype: dtype for MXU operands (bfloat16 by default — the MXU is
    natively bf16 on all generations; accumulation / bias / residual / LN stay
    in f32).  Pass jnp.float32 for a bit-tighter (but slower, emulated) path.
    # TODO(synk): optional fp8 weight storage for v7x is not implemented.
    """
    d_model, d_inner = w1.shape
    assert w2.shape == (d_inner, d_model)
    assert b1.shape == (d_inner,) and b2.shape == (d_model,)
    mxu_dtype = jnp.dtype(mxu_dtype)
    bpe_w = mxu_dtype.itemsize

    dm_p = _round_up(d_model, 128)                 # lane-dense feature axis
    di_min = _round_up(d_inner, 128)

    vmem_cap = _tpu_vmem_capacity()
    vmem_budget = int(0.78 * vmem_cap)

    # Residency check with a nominal 256-row batch tile (weight bytes dominate;
    # keep a 2x buffer allowance on the weights to be safe).
    nominal_tb = 256
    resident_fp = (2 * 2 * dm_p * di_min * bpe_w          # W1 + W2
                   + nominal_tb * di_min * 4              # h intermediate (f32)
                   + 4 * nominal_tb * dm_p * 4            # x / out tiles
                   + 2 * nominal_tb * dm_p * 4            # epilogue temporaries
                   + 2 * (di_min + 3 * dm_p) * 4)         # biases / LN params

    if force_k_tile is None and resident_fp <= int(0.8 * vmem_budget):
        resident, di_p, tile_k_eff = True, di_min, di_min
    else:
        tk = tile_k if force_k_tile is None else force_k_tile
        tk = max(128, _round_up(tk, 128))
        nk = max(2, pl.cdiv(di_min, tk))
        tile_k_eff = _round_up(pl.cdiv(di_min, nk), 128)
        di_p = nk * tile_k_eff
        resident = False

    # Wrapper-side zero padding + dtype cast, done once (layout plumbing).
    f32 = jnp.float32
    w1p = (jnp.zeros((dm_p, di_p), f32).at[:d_model, :d_inner]
           .set(w1.astype(f32)).astype(mxu_dtype))
    w2p = (jnp.zeros((di_p, dm_p), f32).at[:d_inner, :d_model]
           .set(w2.astype(f32)).astype(mxu_dtype))
    b1p = jnp.zeros((1, di_p), f32).at[0, :d_inner].set(b1.astype(f32))
    b2p = jnp.zeros((1, dm_p), f32).at[0, :d_model].set(b2.astype(f32))
    gap = jnp.zeros((1, dm_p), f32).at[0, :d_model].set(ln_a.astype(f32))
    gbp = jnp.zeros((1, dm_p), f32).at[0, :d_model].set(ln_b.astype(f32))

    return SupportEncoderParams(w1p, b1p, w2p, b2p, gap, gbp,
                                d_model, d_inner, dm_p, di_p, resident,
                                tile_k_eff, eps, mxu_dtype)


# --------------------------------------------------------------------------
# Forward call.
# --------------------------------------------------------------------------
def support_encoder_apply(params, x, *, tile_b=256, min_batch_tiles=2):
    p = params
    B, d_model = x.shape
    assert d_model == p.d_model
    x_dtype = jnp.dtype(x.dtype)
    bpe_x = x_dtype.itemsize
    bpe_w = p.mxu_dtype.itemsize
    row_align = 16 if x_dtype == jnp.bfloat16 else 8
    cast_x = p.mxu_dtype != x_dtype

    # Batch tiling: balanced tiles (cap padding waste for awkward B).  When the
    # weights are streamed (k-tiled fallback) raise the tile so flops per
    # streamed weight byte clears the HBM crossover (~512 rows; tune ~704-768
    # on v6e if needed).  Split a large single tile in two so both v7x
    # TensorCores get work (harmless extra grid step on 1-TC chips).
    target = tile_b if p.resident else max(tile_b, 512)
    n_bt = max(1, pl.cdiv(B, target))
    if n_bt < min_batch_tiles and B >= min_batch_tiles * 128:
        n_bt = min_batch_tiles
    tile_b_eff = _round_up(pl.cdiv(B, n_bt), row_align)
    B_p = n_bt * tile_b_eff
    grid_b = n_bt

    # Input padding — skipped entirely when already aligned.
    if B_p == B and p.dm_p == d_model:
        xp = x
    else:
        xp = jnp.zeros((B_p, p.dm_p), x.dtype).at[:B, :d_model].set(x)

    vmem_cap = _tpu_vmem_capacity()

    if p.resident:
        grid = (grid_b,)
        in_specs = [
            pl.BlockSpec((tile_b_eff, p.dm_p), lambda i: (i, 0)),   # x
            pl.BlockSpec((p.dm_p, p.di_p),     lambda i: (0, 0)),   # W1 (resident)
            pl.BlockSpec((1, p.di_p),          lambda i: (0, 0)),   # b1
            pl.BlockSpec((p.di_p, p.dm_p),     lambda i: (0, 0)),   # W2 (resident)
            pl.BlockSpec((1, p.dm_p),          lambda i: (0, 0)),   # b2
            pl.BlockSpec((1, p.dm_p),          lambda i: (0, 0)),   # LN a_2
            pl.BlockSpec((1, p.dm_p),          lambda i: (0, 0)),   # LN b_2
        ]
        out_specs = pl.BlockSpec((tile_b_eff, p.dm_p), lambda i: (i, 0))
        scratch_shapes = []
        dim_sem = ("parallel",)
        kernel = functools.partial(
            _support_encoder_kernel_resident, eps=p.eps, d_model=p.d_model,
            dm_p=p.dm_p, mxu_dtype=p.mxu_dtype)
        vmem_est = (4 * tile_b_eff * p.dm_p * bpe_x            # x + out (2x buf)
                    + 2 * 2 * p.dm_p * p.di_p * bpe_w          # W1 + W2
                    + 2 * (p.di_p + 3 * p.dm_p) * 4
                    + tile_b_eff * p.di_p * 4                  # h
                    + 2 * tile_b_eff * p.dm_p * 4)             # epilogue temps
        weight_bytes = 2 * p.dm_p * p.di_p * bpe_w             # fetched once
    else:
        nk = p.di_p // p.tile_k
        grid = (grid_b, nk)
        in_specs = [
            pl.BlockSpec((tile_b_eff, p.dm_p), lambda i, k: (i, 0)),   # x
            pl.BlockSpec((p.dm_p, p.tile_k),   lambda i, k: (0, k)),   # W1 (N-tiled)
            pl.BlockSpec((1, p.tile_k),        lambda i, k: (0, k)),   # b1
            pl.BlockSpec((p.tile_k, p.dm_p),   lambda i, k: (k, 0)),   # W2 (K-tiled)
            pl.BlockSpec((1, p.dm_p),          lambda i, k: (0, 0)),   # b2
            pl.BlockSpec((1, p.dm_p),          lambda i, k: (0, 0)),   # LN a_2
            pl.BlockSpec((1, p.dm_p),          lambda i, k: (0, 0)),   # LN b_2
        ]
        out_specs = pl.BlockSpec((tile_b_eff, p.dm_p), lambda i, k: (i, 0))
        scratch_shapes = [pltpu.VMEM((tile_b_eff, p.dm_p), jnp.float32)]   # acc
        if cast_x:
            scratch_shapes.append(pltpu.VMEM((tile_b_eff, p.dm_p), p.mxu_dtype))
        dim_sem = ("parallel", "arbitrary")
        kernel = functools.partial(
            _support_encoder_kernel_ktiled, eps=p.eps, d_model=p.d_model,
            dm_p=p.dm_p, mxu_dtype=p.mxu_dtype, cast_x=cast_x)
        vmem_est = (4 * tile_b_eff * p.dm_p * bpe_x
                    + 2 * p.dm_p * p.tile_k * bpe_w            # W1 tiles (2x buf)
                    + 2 * p.tile_k * p.dm_p * bpe_w            # W2 tiles (2x buf)
                    + 2 * (p.tile_k + 3 * p.dm_p) * 4
                    + tile_b_eff * p.dm_p * 4                  # acc scratch
                    + (tile_b_eff * p.dm_p * bpe_w if cast_x else 0)
                    + tile_b_eff * p.tile_k * 4                # h
                    + 2 * tile_b_eff * p.dm_p * 4)
        weight_bytes = 2 * p.dm_p * p.di_p * bpe_w * grid_b    # re-streamed per i

    # Generation-aware scoped VMEM limit (headroom for Mosaic scratch).
    vmem_limit = int(min(max(int(1.3 * vmem_est), 16 << 20), int(0.8 * vmem_cap)))

    flops = 4 * B_p * p.dm_p * p.di_p
    bytes_acc = (2 * B_p * p.dm_p * bpe_x + weight_bytes
                 + (p.di_p + 3 * p.dm_p) * 4)
    cost = pl.CostEstimate(flops=int(flops), transcendentals=int(2 * B_p),
                           bytes_accessed=int(bytes_acc))

    out = pl.pallas_call(
        kernel,
        out_shape=jax.ShapeDtypeStruct((B_p, p.dm_p), x.dtype),
        grid_spec=pltpu.PrefetchScalarGridSpec(
            num_scalar_prefetch=0,
            grid=grid,
            in_specs=in_specs,
            out_specs=out_specs,
            scratch_shapes=scratch_shapes),
        compiler_params=pltpu.CompilerParams(
            dimension_semantics=dim_sem,
            vmem_limit_bytes=vmem_limit),
        cost_estimate=cost,
    )(xp, p.w1, p.b1, p.w2, p.b2, p.ln_a, p.ln_b)

    if B_p == B and p.dm_p == d_model:
        return out
    return out[:B, :d_model]


def support_encoder(x, w1, b1, w2, b2, ln_a, ln_b, *, eps=1e-3,
                    mxu_dtype=jnp.bfloat16, tile_b=256, tile_k=512,
                    force_k_tile=None):
    """Convenience one-shot wrapper (prefer prepare_... + apply for reuse)."""
    params = prepare_support_encoder_params(
        w1, b1, w2, b2, ln_a, ln_b, eps=eps, mxu_dtype=mxu_dtype,
        tile_k=tile_k, force_k_tile=force_k_tile)
    return support_encoder_apply(params, x, tile_b=tile_b)


# --------------------------------------------------------------------------
# Reference + self-test.
# --------------------------------------------------------------------------
def _xavier_normal(key, fan_out, fan_in):
    # matches torch.nn.init.xavier_normal_ on a (fan_out, fan_in) weight
    std = (2.0 / (fan_in + fan_out)) ** 0.5
    return std * jax.random.normal(key, (fan_out, fan_in), dtype=jnp.float32)


def reference(x, w1, b1, w2, b2, ln_a, ln_b, eps=1e-3):
    h = jnp.maximum(x @ w1 + b1, 0.0)
    out = h @ w2 + b2
    z = out + x
    if z.shape[-1] == 1:
        return z
    mu = jnp.mean(z, axis=-1, keepdims=True)
    sigma = jnp.sqrt(jnp.sum((z - mu) ** 2, axis=-1, keepdims=True)
                     / (z.shape[-1] - 1))
    return (z - mu) / (sigma + eps) * ln_a + ln_b


if __name__ == "__main__":
    key = jax.random.PRNGKey(0)
    B, d_model, d_inner = 16, 32, 64

    k_x, k_w1, k_b1, k_w2, k_b2 = jax.random.split(key, 5)

    x = jax.random.normal(k_x, (B, d_model), dtype=jnp.float32)

    # proj1.weight: (d_inner, d_model) xavier-normal; stored transposed (d_model, d_inner)
    w1 = _xavier_normal(k_w1, d_inner, d_model).T
    b1 = (1.0 / (d_model ** 0.5)) * jax.random.uniform(k_b1, (d_inner,),
                                                       minval=-1.0, maxval=1.0)
    # proj2.weight: (d_model, d_inner) xavier-normal; stored transposed (d_inner, d_model)
    w2 = _xavier_normal(k_w2, d_model, d_inner).T
    b2 = (1.0 / (d_inner ** 0.5)) * jax.random.uniform(k_b2, (d_model,),
                                                       minval=-1.0, maxval=1.0)
    # LayerNormalization params: ones / zeros
    ln_a = jnp.ones((d_model,), dtype=jnp.float32)
    ln_b = jnp.zeros((d_model,), dtype=jnp.float32)

    y_ref = reference(x, w1, b1, w2, b2, ln_a, ln_b)

    # 1) Resident-weights path, f32 MXU operands — tight tolerance.
    params_f32 = prepare_support_encoder_params(
        w1, b1, w2, b2, ln_a, ln_b, mxu_dtype=jnp.float32)
    y = support_encoder_apply(params_f32, x)
    jax.block_until_ready(y)
    assert y.shape == (B, d_model)
    assert jnp.allclose(y, y_ref, atol=1e-4, rtol=1e-4), "resident f32 mismatch"

    # 2) Resident-weights path, default bf16 MXU operands — looser tolerance.
    params_bf16 = prepare_support_encoder_params(w1, b1, w2, b2, ln_a, ln_b)
    y_bf16 = support_encoder_apply(params_bf16, x)
    jax.block_until_ready(y_bf16)
    assert jnp.allclose(y_bf16, y_ref, atol=5e-2, rtol=5e-2), "resident bf16 mismatch"

    # 3) Forced k-tiled fallback (streamed weights), f32 MXU — tight tolerance.
    y_kt = support_encoder(x, w1, b1, w2, b2, ln_a, ln_b,
                           mxu_dtype=jnp.float32, force_k_tile=128)
    jax.block_until_ready(y_kt)
    assert jnp.allclose(y_kt, y_ref, atol=1e-4, rtol=1e-4), "k-tiled f32 mismatch"

    # 4) Forced k-tiled fallback, bf16 MXU (exercises the cached x cast scratch).
    y_kt_bf16 = support_encoder(x, w1, b1, w2, b2, ln_a, ln_b,
                                mxu_dtype=jnp.bfloat16, force_k_tile=128)
    jax.block_until_ready(y_kt_bf16)
    assert jnp.allclose(y_kt_bf16, y_ref, atol=5e-2, rtol=5e-2), "k-tiled bf16 mismatch"

    # TODO(synk): training-mode dropout (p=0.1) is not implemented; inference identity only.
    print("KERNEL_OK")
</pallas_src>

<mosaic_0001>
module attributes {stable_mosaic.version = 11 : i64} {
  func.func @_support_encoder_kernel_resident(%arg0: i32, %arg1: memref<16x128xf32, #tpu.memory_space<vmem>>, %arg2: memref<128x128xf32, #tpu.memory_space<vmem>>, %arg3: memref<1x128xf32, #tpu.memory_space<vmem>>, %arg4: memref<128x128xf32, #tpu.memory_space<vmem>>, %arg5: memref<1x128xf32, #tpu.memory_space<vmem>>, %arg6: memref<1x128xf32, #tpu.memory_space<vmem>>, %arg7: memref<1x128xf32, #tpu.memory_space<vmem>>, %arg8: memref<16x128xf32, #tpu.memory_space<vmem>>) attributes {dimension_semantics = [#tpu.dimension_semantics<parallel>], iteration_bounds = array<i64: 1>, scalar_prefetch = 0 : i64, scratch_operands = 0 : i64, tpu.core_type = #tpu.core_type<tc>, window_params = [{transform_indices = @transform_0, window_bounds = array<i64: 16, 128>}, {pipeline_mode = #tpu.pipeline_mode<synchronous>, transform_indices = @transform_1, window_bounds = array<i64: 128, 128>}, {pipeline_mode = #tpu.pipeline_mode<synchronous>, transform_indices = @transform_2, window_bounds = array<i64: 1, 128>}, {pipeline_mode = #tpu.pipeline_mode<synchronous>, transform_indices = @transform_3, window_bounds = array<i64: 128, 128>}, {pipeline_mode = #tpu.pipeline_mode<synchronous>, transform_indices = @transform_4, window_bounds = array<i64: 1, 128>}, {pipeline_mode = #tpu.pipeline_mode<synchronous>, transform_indices = @transform_5, window_bounds = array<i64: 1, 128>}, {pipeline_mode = #tpu.pipeline_mode<synchronous>, transform_indices = @transform_6, window_bounds = array<i64: 1, 128>}, {transform_indices = @transform_7, window_bounds = array<i64: 16, 128>}]} {
    %c0 = arith.constant 0 : index
    %c0_0 = arith.constant 0 : index
    %0 = vector.load %arg1[%c0, %c0_0] : memref<16x128xf32, #tpu.memory_space<vmem>>, vector<16x128xf32>
    %c0_1 = arith.constant 0 : index
    %c0_2 = arith.constant 0 : index
    %1 = vector.load %arg2[%c0_1, %c0_2] : memref<128x128xf32, #tpu.memory_space<vmem>>, vector<128x128xf32>
    %cst = arith.constant dense<0.000000e+00> : vector<16x128xf32>
    %2 = tpu.matmul %0, %1, %cst {dimension_numbers = #tpu.dot_dimension_numbers<[1], [0], [0], [1], [0, 0, 1, 1], [], []>} : vector<16x128xf32>, vector<128x128xf32>, vector<16x128xf32> -> vector<16x128xf32>
    %c0_3 = arith.constant 0 : index
    %c0_4 = arith.constant 0 : index
    %3 = vector.load %arg3[%c0_3, %c0_4] : memref<1x128xf32, #tpu.memory_space<vmem>>, vector<1x128xf32>
    %4 = vector.broadcast %3 : vector<1x128xf32> to vector<16x128xf32>
    %5 = arith.addf %2, %4 : vector<16x128xf32>
    %cst_5 = arith.constant 0.000000e+00 : f32
    %6 = vector.broadcast %cst_5 : f32 to vector<16x128xf32>
    %7 = arith.maximumf %5, %6 : vector<16x128xf32>
    %c0_6 = arith.constant 0 : index
    %c0_7 = arith.constant 0 : index
    %8 = vector.load %arg4[%c0_6, %c0_7] : memref<128x128xf32, #tpu.memory_space<vmem>>, vector<128x128xf32>
    %cst_8 = arith.constant dense<0.000000e+00> : vector<16x128xf32>
    %9 = tpu.matmul %7, %8, %cst_8 {dimension_numbers = #tpu.dot_dimension_numbers<[1], [0], [0], [1], [0, 0, 1, 1], [], []>} : vector<16x128xf32>, vector<128x128xf32>, vector<16x128xf32> -> vector<16x128xf32>
    %c0_9 = arith.constant 0 : index
    %c0_10 = arith.constant 0 : index
    %10 = vector.load %arg5[%c0_9, %c0_10] : memref<1x128xf32, #tpu.memory_space<vmem>>, vector<1x128xf32>
    %11 = vector.broadcast %10 : vector<1x128xf32> to vector<16x128xf32>
    %12 = arith.addf %9, %11 : vector<16x128xf32>
    %13 = arith.addf %12, %0 : vector<16x128xf32>
    %c0_11 = arith.constant 0 : index
    %c0_12 = arith.constant 0 : index
    %14 = vector.load %arg6[%c0_11, %c0_12] : memref<1x128xf32, #tpu.memory_space<vmem>>, vector<1x128xf32>
    %c0_13 = arith.constant 0 : index
    %c0_14 = arith.constant 0 : index
    %15 = vector.load %arg7[%c0_13, %c0_14] : memref<1x128xf32, #tpu.memory_space<vmem>>, vector<1x128xf32>
    %cst_15 = arith.constant dense<0.000000e+00> : vector<16xf32>
    %16 = vector.multi_reduction <add>, %13, %cst_15 [1] : vector<16x128xf32> to vector<16xf32>
    %17 = vector.shape_cast %16 : vector<16xf32> to vector<16x1xf32>
    %cst_16 = arith.constant 3.125000e-02 : f32
    %18 = vector.broadcast %cst_16 : f32 to vector<16x1xf32>
    %19 = arith.mulf %17, %18 : vector<16x1xf32>
    %20 = vector.broadcast %19 : vector<16x1xf32> to vector<16x128xf32>
    %21 = arith.subf %13, %20 : vector<16x128xf32>
    %22 = tpu.iota {dimensions = array<i32: 1>} : vector<1x128xi32>
    %c32_i32 = arith.constant 32 : i32
    %23 = vector.broadcast %c32_i32 : i32 to vector<1x128xi32>
    %24 = arith.cmpi slt, %22, %23 : vector<1x128xi32>
    %cst_17 = arith.constant 0.000000e+00 : f32
    %25 = vector.shape_cast %24 : vector<1x128xi1> to vector<1x128xi1>
    %26 = vector.broadcast %25 : vector<1x128xi1> to vector<16x128xi1>
    %27 = vector.broadcast %cst_17 : f32 to vector<16x128xf32>
    %28 = arith.select %26, %21, %27 : vector<16x128xi1>, vector<16x128xf32>
    %29 = arith.mulf %28, %28 : vector<16x128xf32>
    %cst_18 = arith.constant dense<0.000000e+00> : vector<16xf32>
    %30 = vector.multi_reduction <add>, %29, %cst_18 [1] : vector<16x128xf32> to vector<16xf32>
    %31 = vector.shape_cast %30 : vector<16xf32> to vector<16x1xf32>
    %cst_19 = arith.constant 0.0322580636 : f32
    %32 = vector.broadcast %cst_19 : f32 to vector<16x1xf32>
    %33 = arith.mulf %31, %32 : vector<16x1xf32>
    %34 = math.sqrt %33 : vector<16x1xf32>
    %cst_20 = arith.constant 1.000000e-03 : f32
    %35 = vector.broadcast %cst_20 : f32 to vector<16x1xf32>
    %36 = arith.addf %34, %35 : vector<16x1xf32>
    %37 = tpu.reciprocal %36 : vector<16x1xf32> -> vector<16x1xf32>
    %38 = vector.broadcast %37 : vector<16x1xf32> to vector<16x128xf32>
    %39 = arith.mulf %28, %38 : vector<16x128xf32>
    %40 = vector.broadcast %14 : vector<1x128xf32> to vector<16x128xf32>
    %41 = arith.mulf %39, %40 : vector<16x128xf32>
    %42 = vector.broadcast %15 : vector<1x128xf32> to vector<16x128xf32>
    %43 = arith.addf %41, %42 : vector<16x128xf32>
    %c0_21 = arith.constant 0 : index
    %c0_22 = arith.constant 0 : index
    %44 = vector.load %arg8[%c0_21, %c0_22] : memref<16x128xf32, #tpu.memory_space<vmem>>, vector<16x128xf32>
    tpu.vector_store %arg8[%c0_21, %c0_22], %43 {strides = array<i32>} : memref<16x128xf32, #tpu.memory_space<vmem>>, vector<16x128xf32>,
    return
  }
  func.func @transform_0(%arg0: i32) -> (i32, i32) {
    %c0_i32 = arith.constant 0 : i32
    %c0_i32_0 = arith.constant 0 : i32
    return %arg0, %c0_i32 : i32, i32
  }
  func.func @transform_1(%arg0: i32) -> (i32, i32) {
    %c0_i32 = arith.constant 0 : i32
    %c0_i32_0 = arith.constant 0 : i32
    %c0_i32_1 = arith.constant 0 : i32
    return %c0_i32, %c0_i32_0 : i32, i32
  }
  func.func @transform_2(%arg0: i32) -> (i32, i32) {
    %c0_i32 = arith.constant 0 : i32
    %c0_i32_0 = arith.constant 0 : i32
    %c0_i32_1 = arith.constant 0 : i32
    return %c0_i32, %c0_i32_0 : i32, i32
  }
  func.func @transform_3(%arg0: i32) -> (i32, i32) {
    %c0_i32 = arith.constant 0 : i32
    %c0_i32_0 = arith.constant 0 : i32
    %c0_i32_1 = arith.constant 0 : i32
    return %c0_i32, %c0_i32_0 : i32, i32
  }
  func.func @transform_4(%arg0: i32) -> (i32, i32) {
    %c0_i32 = arith.constant 0 : i32
    %c0_i32_0 = arith.constant 0 : i32
    %c0_i32_1 = arith.constant 0 : i32
    return %c0_i32, %c0_i32_0 : i32, i32
  }
  func.func @transform_5(%arg0: i32) -> (i32, i32) {
    %c0_i32 = arith.constant 0 : i32
    %c0_i32_0 = arith.constant 0 : i32
    %c0_i32_1 = arith.constant 0 : i32
    return %c0_i32, %c0_i32_0 : i32, i32
  }
  func.func @transform_6(%arg0: i32) -> (i32, i32) {
    %c0_i32 = arith.constant 0 : i32
    %c0_i32_0 = arith.constant 0 : i32
    %c0_i32_1 = arith.constant 0 : i32
    return %c0_i32, %c0_i32_0 : i32, i32
  }
  func.func @transform_7(%arg0: i32) -> (i32, i32) {
    %c0_i32 = arith.constant 0 : i32
    %c0_i32_0 = arith.constant 0 : i32
    return %arg0, %c0_i32 : i32, i32
  }
}

</mosaic_0001>

<bundles_post_ra>
// kernel: tpu_custom_call.1
= control target key start
LH: loop header
LB: loop body
LE: loop exit
PB: predicated region body
PF: predicated region fallthrough
CT: control target
= control target key end

     0   :  { %12 = vsyncpa [#allocation3], 0  ;;  %s518_s0 = inlined_call_operand.hbm [shape: f32[16,128], index: 0, kind: input, shape index: {}]   ;;  %s519_s1 = inlined_call_operand.hbm [shape: f32[128,128], index: 1, kind: input, shape index: {}]   ;;  %s520_s2 = inlined_call_operand.vmem [shape: f32[1,128], index: 2, kind: input, shape index: {}]   ;;  %s521_s3 = inlined_call_operand.hbm [shape: f32[128,128], index: 3, kind: input, shape index: {}]   ;;  %s522_s4 = inlined_call_operand.vmem [shape: f32[1,128], index: 4, kind: input, shape index: {}]   ;;  %s523_s5 = inlined_call_operand.vmem [shape: f32[1,128], index: 5, kind: input, shape index: {}]   ;;  %s524_s6 = inlined_call_operand.vmem [shape: f32[1,128], index: 6, kind: input, shape index: {}]   ;;  %s525_s7 = inlined_call_operand.hbm [shape: f32[16,128], index: 7, kind: output, shape index: {}]  }
   0x1   :  { %13 = vsyncpa [#allocation6], 0 }
   0x2   :  { %14 = vsyncpa [#allocation4], 0  ;;  %s32_s26 = sshll.u32 %s519_s1, 4  ;;  %s431_s27 = smov [#allocation5]   ;;  %s33_s26 = int_to_ptr.hbm [resolvable:$true] %s32_s26 }
   0x3   :  { %s34_s28 = sshll.u32 %s431_s27, 4  ;;  %s19_s8 = sshll.u32 %s518_s0, 4  ;;  %s35_s28 = int_to_ptr.vmem [resolvable:$true] %s34_s28  ;;  %s20_s8 = int_to_ptr.hbm [resolvable:$true] %s19_s8 }
   0x4   :  { %s432_s9 = smov 128   ;;  %s433_s10 = smov 8  }
   0x5   :  { %40 = dma.hbm_to_vmem [thread:$0]  %s33_s26, 2048, %s35_s28, [#allocation6], %s432_s9, %s432_s9, %s433_s10  }
   0x6   :  { %s434_s11 = smov [#allocation2]   ;;  %s47_s1 = sshll.u32 %s521_s3, 4  ;;  %s48_s1 = int_to_ptr.hbm [resolvable:$true] %s47_s1 }
   0x7   :  { %s21_s12 = sshll.u32 %s434_s11, 4  ;;  %s435_s0 = smov [#allocation7]   ;;  %s22_s12 = int_to_ptr.vmem [resolvable:$true] %s21_s12 }
   0x8   :  { %27 = dma.hbm_to_vmem [thread:$0]  %s20_s8, 256, %s22_s12, [#allocation3], %s432_s9, %s432_s9, %s433_s10  }
   0x9   :  { %s49_s15 = sshll.u32 %s435_s0, 4  ;;  %s50_s15 = int_to_ptr.vmem [resolvable:$true] %s49_s15 }
   0xa   :  { %55 = dma.hbm_to_vmem [thread:$0]  %s48_s1, 2048, %s50_s15, [#allocation6], %s432_s9, %s432_s9, %s433_s10  }
   0xb   :  { %425 = dma.done.wait [#allocation3], 256  }
   0xc   :  { %426 = vsyncadd [#allocation3], 4294967040 }
   0xd   :  { %427 = dma.done.wait [#allocation6], 4096  }
   0xe   :  { %428 = vsyncadd [#allocation6], 4294963200  ;;  %v91_v0 = vld [vmem:[#allocation5 + $0x78] sm:$0xff]  ;;  %v90_v1 = vld [vmem:[#allocation5 + $0x70] sm:$0xff]  ;;  %v176_v48 = vlaneseq  ;;  %s265_s23 = sshll.u32 %s525_s7, 4  ;;  %s266_s23 = int_to_ptr.hbm [resolvable:$true] %s265_s23 }
   0xf   :  { %96 = vmatpush.msra.mxu0 %v91_v0  ;;  %279 = vmatpush.msra.mxu2 %v91_v0  ;;  %v89_v2 = vld [vmem:[#allocation5 + $0x68] sm:$0xff]  ;;  %v88_v3 = vld [vmem:[#allocation5 + $0x60] sm:$0xff]  ;;  %v87_v4 = vld [vmem:[#allocation5 + $0x58] sm:$0xff] }
  0x10   :  { %v136_v5 = vld [vmem:[#allocation7 + $0x78] sm:$0xff]  ;;  %v135_v6 = vld [vmem:[#allocation7 + $0x70] sm:$0xff]  ;;  %v134_v8 = vld [vmem:[#allocation7 + $0x68] sm:$0xff]  ;;  %v177_v49 = vand.u32 127, %v176_v48 }
  0x11   :  { %97 = vmatpush.msra.mxu0 %v90_v1  ;;  %280 = vmatpush.msra.mxu2 %v90_v1  ;;  %v86_v7 = vld [vmem:[#allocation5 + $0x50] sm:$0xff]  ;;  %v85_v9 = vld [vmem:[#allocation5 + $0x48] sm:$0xff]  ;;  %v133_v10 = vld [vmem:[#allocation7 + $0x60] sm:$0xff] }
  0x12   :  { %141 = vmatpush.msra.mxu1 %v136_v5  ;;  %295 = vmatpush.msra.mxu3 %v136_v5  ;;  %v84_v11 = vld [vmem:[#allocation5 + $0x40] sm:$0xff]  ;;  %v132_v12 = vld [vmem:[#allocation7 + $0x58] sm:$0xff]  ;;  %v131_v14 = vld [vmem:[#allocation7 + $0x50] sm:$0xff]  ;;  %vm178_vm0 = vcmp.lt.s32.totalorder %v177_v49, 32 }
  0x13   :  { %98 = vmatpush.msra.mxu0 %v89_v2  ;;  %281 = vmatpush.msra.mxu2 %v89_v2  ;;  %v83_v13 = vld [vmem:[#allocation5 + $0x38] sm:$0xff]  ;;  %v82_v15 = vld [vmem:[#allocation5 + $0x30] sm:$0xff]  ;;  %v130_v16 = vld [vmem:[#allocation7 + $0x48] sm:$0xff] }
  0x14   :  { %142 = vmatpush.msra.mxu1 %v135_v6  ;;  %296 = vmatpush.msra.mxu3 %v135_v6  ;;  %v81_v17 = vld [vmem:[#allocation5 + $0x28] sm:$0xff]  ;;  %v129_v18 = vld [vmem:[#allocation7 + $0x40] sm:$0xff]  ;;  %v128_v20 = vld [vmem:[#allocation7 + $0x38] sm:$0xff] }
  0x15   :  { %99 = vmatpush.msra.mxu0 %v88_v3  ;;  %282 = vmatpush.msra.mxu2 %v88_v3  ;;  %v80_v19 = vld [vmem:[#allocation5 + $0x20] sm:$0xff]  ;;  %v79_v21 = vld [vmem:[#allocation5 + $0x18] sm:$0xff]  ;;  %v127_v22 = vld [vmem:[#allocation7 + $0x30] sm:$0xff] }
  0x16   :  { %143 = vmatpush.msra.mxu1 %v134_v8  ;;  %297 = vmatpush.msra.mxu3 %v134_v8  ;;  %v78_v23 = vld [vmem:[#allocation5 + $0x10] sm:$0xff]  ;;  %v126_v24 = vld [vmem:[#allocation7 + $0x28] sm:$0xff]  ;;  %v125_v26 = vld [vmem:[#allocation7 + $0x20] sm:$0xff] }
  0x17   :  { %100 = vmatpush.msra.mxu0 %v87_v4  ;;  %283 = vmatpush.msra.mxu2 %v87_v4  ;;  %v77_v25 = vld [vmem:[#allocation5 + $0x8] sm:$0xff]  ;;  %v76_v27 = vld [vmem:[#allocation5] sm:$0xff]  ;;  %v74_v28 = vld [vmem:[#allocation2] sm:$0xff] }
  0x18   :  { %144 = vmatpush.msra.mxu1 %v133_v10  ;;  %298 = vmatpush.msra.mxu3 %v133_v10  ;;  %v75_v29 = vld [vmem:[#allocation2 + $0x8] sm:$0xff]  ;;  %v123_v31 = vld [vmem:[#allocation7 + $0x10] sm:$0xff]  ;;  %v122_v32 = vld [vmem:[#allocation7 + $0x8] sm:$0xff] }
  0x19   :  { %101 = vmatpush.msra.mxu0 %v86_v7  ;;  %284 = vmatpush.msra.mxu2 %v86_v7  ;;  %v124_v30 = vld [vmem:[#allocation7 + $0x18] sm:$0xff]  ;;  %v121_v33 = vld [vmem:[#allocation7] sm:$0xff]  ;;  %v317_v34 = vld [vmem:[%s520_s2] ss:$0 sm:$0xff] }
  0x1a   :  { %145 = vmatpush.msra.mxu1 %v132_v12  ;;  %299 = vmatpush.msra.mxu3 %v132_v12  ;;  %v318_v41 = vld [vmem:[%s522_s4] ss:$0 sm:$0xff] }
  0x1b   :  { %102 = vmatpush.msra.mxu0 %v85_v9  ;;  %285 = vmatpush.msra.mxu2 %v85_v9 }
  0x1c   :  { %146 = vmatpush.msra.mxu1 %v131_v14  ;;  %300 = vmatpush.msra.mxu3 %v131_v14 }
  0x1d   :  { %103 = vmatpush.msra.mxu0 %v84_v11  ;;  %286 = vmatpush.msra.mxu2 %v84_v11 }
  0x1e   :  { %147 = vmatpush.msra.mxu1 %v130_v16  ;;  %301 = vmatpush.msra.mxu3 %v130_v16 }
  0x1f   :  { %104 = vmatpush.msra.mxu0 %v83_v13  ;;  %287 = vmatpush.msra.mxu2 %v83_v13 }
  0x20   :  { %148 = vmatpush.msra.mxu1 %v129_v18  ;;  %302 = vmatpush.msra.mxu3 %v129_v18 }
  0x21   :  { %105 = vmatpush.msra.mxu0 %v82_v15  ;;  %288 = vmatpush.msra.mxu2 %v82_v15 }
  0x22   :  { %149 = vmatpush.msra.mxu1 %v128_v20  ;;  %303 = vmatpush.msra.mxu3 %v128_v20 }
  0x23   :  { %106 = vmatpush.msra.mxu0 %v81_v17  ;;  %289 = vmatpush.msra.mxu2 %v81_v17 }
  0x24   :  { %150 = vmatpush.msra.mxu1 %v127_v22  ;;  %304 = vmatpush.msra.mxu3 %v127_v22 }
  0x25   :  { %107 = vmatpush.msra.mxu0 %v80_v19  ;;  %290 = vmatpush.msra.mxu2 %v80_v19 }
  0x26   :  { %151 = vmatpush.msra.mxu1 %v126_v24  ;;  %305 = vmatpush.msra.mxu3 %v126_v24 }
  0x27   :  { %108 = vmatpush.msra.mxu0 %v79_v21  ;;  %291 = vmatpush.msra.mxu2 %v79_v21 }
  0x28   :  { %152 = vmatpush.msra.mxu1 %v125_v26  ;;  %306 = vmatpush.msra.mxu3 %v125_v26 }
  0x29   :  { %109 = vmatpush.msra.mxu0 %v78_v23  ;;  %292 = vmatpush.msra.mxu2 %v78_v23 }
  0x2a   :  { %153 = vmatpush.msra.mxu1 %v124_v30  ;;  %307 = vmatpush.msra.mxu3 %v124_v30 }
  0x2b   :  { %110 = vmatpush.msra.mxu0 %v77_v25  ;;  %293 = vmatpush.msra.mxu2 %v77_v25 }
  0x2c   :  { %154 = vmatpush.msra.mxu1 %v123_v31  ;;  %308 = vmatpush.msra.mxu3 %v123_v31  ;;  %v319_v31 = vld [vmem:[%s523_s5] ss:$0 sm:$0xff]  ;;  %s436_s5 = smov [#allocation8]  }
  0x2d   :  { %111 = vmatpush.msra.mxu0 %v76_v27  ;;  %294 = vmatpush.msra.mxu2 %v76_v27 }
  0x2e   :  { %112 = vmatmul.f32.vlgmr.msra.gmra.mxu0 %v74_v28  ;;  %115 = vmatmul.f32.vlgmr.msra.gmra.mxu2 %v75_v29 }
  0x2f   :  { %155 = vmatpush.msra.mxu1 %v122_v32  ;;  %309 = vmatpush.msra.mxu3 %v122_v32 }
  0x31   :  { %156 = vmatpush.msra.mxu1 %v121_v33  ;;  %310 = vmatpush.msra.mxu3 %v121_v33 }
  0xab   :  { %v113_v35 = vpop.f32.mrf.mxu0 }
  0xac   :  { %v114_v36 = vadd.f32 %v317_v34, %v113_v35 }
  0xae   :  { %v119_v37 = vmax.f32 %v114_v36, 0.0 }
  0xb0   :  { %157 = vmatmul.f32.vlgmr.msra.gmra.mxu1 %v119_v37 }
  0xb1   :  { %v116_v38 = vpop.f32.mrf.mxu2 }
  0xb2   :  { %v117_v39 = vadd.f32 %v317_v34, %v116_v38  ;;  %v320_v34 = vld [vmem:[%s524_s6] ss:$0 sm:$0xff]  ;;  %s263_s6 = sshll.u32 %s436_s5, 4  ;;  %s264_s6 = int_to_ptr.vmem [resolvable:$true] %s263_s6 }
  0xb4   :  { %v120_v40 = vmax.f32 %v117_v39, 0.0 }
  0xb6   :  { %160 = vmatmul.f32.vlgmr.msra.gmra.mxu3 %v120_v40 }
 0x12d   :  { %v158_v42 = vpop.f32.mrf.mxu1 }
 0x12e   :  { %v159_v43 = vadd.f32 %v318_v41, %v158_v42 }
 0x130   :  { %v164_v44 = vadd.f32 %v159_v43, %v74_v28 }
 0x132   :  { %168 = vadd.xlane.f32.xlu0 %v164_v44 }
 0x139   :  { %v161_v45 = vpop.f32.mrf.mxu3 }
 0x13a   :  { %v162_v46 = vadd.f32 %v318_v41, %v161_v45 }
 0x13c   :  { %v165_v47 = vadd.f32 %v162_v46, %v75_v29 }
 0x13e   :  { %170 = vadd.xlane.f32.xlu0 %v165_v47 }
 0x1a5   :  { %v169_v50 = vpop.xlane.xlu0 %168 }
 0x1a6   :  { %v172_v51 = vmul.f32 0.03125, %v169_v50 }
 0x1a8   :  { %v174_v52 = vsub.f32 %v164_v44, %v172_v51 }
 0x1aa   :  { %v181_v53 = vsel %vm178_vm0, %v174_v52, 0.0 }
 0x1ab   :  { %v183_v54 = vmul.f32 %v181_v53, %v181_v53 }
 0x1ad   :  { %185 = vadd.xlane.f32.xlu1 %v183_v54 }
 0x1b1   :  { %v171_v55 = vpop.xlane.xlu0 %170 }
 0x1b2   :  { %v173_v56 = vmul.f32 0.03125, %v171_v55 }
 0x1b4   :  { %v175_v57 = vsub.f32 %v165_v47, %v173_v56 }
 0x1b6   :  { %v501_v58 = vsel %vm178_vm0, %v175_v57, 0.0 }
 0x1b7   :  { %v184_v59 = vmul.f32 %v501_v58, %v501_v58 }
 0x1b9   :  { %187 = vadd.xlane.f32.xlu1 %v184_v59 }
 0x220   :  { %v186_v60 = vpop.xlane.xlu1 %185 }
 0x221   :  { %v189_v61 = vmul.f32 0.032258064, %v186_v60 }
 0x223   :  { %321 = vrsqrt.f32 %v189_v61  ;;  %vm198_vm1 = vcmp.eq.f32.partialorder %v189_v61, inf  ;;  %v201_v8 = vand.u32 2147483648, %v189_v61  ;;  %vm200_vm2 = vcmp.eq.f32.partialorder %v189_v61, 0.0 }
 0x229   :  { %v322_v62 = vpop.eup %321 }
 0x22a   :  { %v192_v63 = vmul.f32 %v322_v62, %v189_v61 }
 0x22c   :  { %v193_v0 = vmul.f32 %v322_v62, %v192_v63  ;;  %v188_v1 = vpop.xlane.xlu1 %187 }
 0x22d   :  { %v190_v2 = vmul.f32 0.032258064, %v188_v1 }
 0x22e   :  { %v194_v3 = vmul.f32 0.5, %v193_v0 }
 0x22f   :  { %323 = vrsqrt.f32 %v190_v2  ;;  %vm210_vm3 = vcmp.eq.f32.partialorder %v190_v2, inf  ;;  %v213_v19 = vand.u32 2147483648, %v190_v2  ;;  %vm212_vm4 = vcmp.eq.f32.partialorder %v190_v2, 0.0 }
 0x230   :  { %v195_v4 = vsub.f32 1.5, %v194_v3 }
 0x232   :  { %v196_v5 = vmul.f32 %v322_v62, %v195_v4 }
 0x234   :  { %v197_v6 = vmul.f32 %v196_v5, %v189_v61 }
 0x235   :  { %v324_v7 = vpop.eup %323 }
 0x236   :  { %v199_v9 = vsel %vm198_vm1, %v189_v61, %v197_v6  ;;  %v204_v10 = vmul.f32 %v324_v7, %v190_v2 }
 0x237   :  { %v202_v11 = vsel %vm200_vm2, %v201_v8, %v199_v9 }
 0x238   :  { %v215_v12 = vadd.f32 0.001, %v202_v11  ;;  %v205_v13 = vmul.f32 %v324_v7, %v204_v10 }
 0x23a   :  { %325 = vrcp.f32 %v215_v12  ;;  %v206_v14 = vmul.f32 0.5, %v205_v13  ;;  %v228_v25 = vand.u32 2147483648, %v215_v12  ;;  %v226_v27 = vand.u32 2147483647, %v215_v12 }
 0x23b   :  { %vm222_vm6 = vweird.f32 %v215_v12 }
 0x23c   :  { %v207_v15 = vsub.f32 1.5, %v206_v14  ;;  %v229_v29 = vor.u32 1.1754944e-38, %v228_v25  ;;  %vm227_vm8 = vcmp.eq.f32.partialorder %v226_v27, 8.507059e+37 }
 0x23e   :  { %v208_v16 = vmul.f32 %v324_v7, %v207_v15 }
 0x240   :  { %v326_v17 = vpop.eup %325  ;;  %v209_v18 = vmul.f32 %v208_v16, %v190_v2 }
 0x241   :  { %v218_v20 = vmul.f32 %v326_v17, %v215_v12  ;;  %vm223_vm5 = vweird.f32 %v326_v17 }
 0x242   :  { %v211_v21 = vsel %vm210_vm3, %v190_v2, %v209_v18  ;;  %vm224_vm7 = vmor %vm222_vm6, %vm223_vm5 }
 0x243   :  { %v214_v22 = vsel %vm212_vm4, %v213_v19, %v211_v21  ;;  %v219_v23 = vsub.f32 1.0, %v218_v20 }
 0x244   :  { %v216_v24 = vadd.f32 0.001, %v214_v22 }
 0x245   :  { %v220_v26 = vmul.f32 %v326_v17, %v219_v23 }
 0x246   :  { %327 = vrcp.f32 %v216_v24  ;;  %v242_v40 = vand.u32 2147483648, %v216_v24  ;;  %v240_v42 = vand.u32 2147483647, %v216_v24  ;;  %vm236_vm10 = vweird.f32 %v216_v24 }
 0x247   :  { %v221_v28 = vadd.f32 %v326_v17, %v220_v26 }
 0x248   :  { %v243_v44 = vor.u32 1.1754944e-38, %v242_v40  ;;  %vm241_vm12 = vcmp.eq.f32.partialorder %v240_v42, 8.507059e+37 }
 0x249   :  { %v225_v30 = vsel %vm224_vm7, %v326_v17, %v221_v28 }
 0x24a   :  { %v230_v32 = vsel %vm227_vm8, %v229_v29, %v225_v30 }
 0x24b   :  { %v245_v33 = vmul.f32 %v230_v32, %v181_v53 }
 0x24c   :  { %v328_v35 = vpop.eup %327 }
 0x24d   :  { %v232_v36 = vmul.f32 %v328_v35, %v216_v24  ;;  %v250_v37 = vmul.f32 %v319_v31, %v245_v33  ;;  %vm237_vm9 = vweird.f32 %v328_v35 }
 0x24e   :  { %vm238_vm11 = vmor %vm236_vm10, %vm237_vm9 }
 0x24f   :  { %v233_v38 = vsub.f32 1.0, %v232_v36  ;;  %v255_v39 = vadd.f32 %v320_v34, %v250_v37 }
 0x251   :  { %v234_v41 = vmul.f32 %v328_v35, %v233_v38  ;;  %257 = vst [vmem:[#allocation8] sm:$0xff] %v255_v39 }
 0x253   :  { %v235_v43 = vadd.f32 %v328_v35, %v234_v41 }
 0x255   :  { %v239_v45 = vsel %vm238_vm11, %v328_v35, %v235_v43 }
 0x256   :  { %v244_v46 = vsel %vm241_vm12, %v243_v44, %v239_v45 }
 0x257   :  { %v246_v47 = vmul.f32 %v244_v46, %v501_v58 }
 0x259   :  { %v251_v48 = vmul.f32 %v319_v31, %v246_v47 }
 0x25b   :  { %v256_v49 = vadd.f32 %v320_v34, %v251_v48 }
 0x25d   :  { %258 = vst [vmem:[#allocation8 + $0x8] sm:$0xff] %v256_v49 }
 0x25e   :  { %271 = dma.vmem_to_hbm [thread:$0]  %s264_s6, 256, %s266_s23, [#allocation4], %s432_s9, %s432_s9, %s433_s10  }
 0x25f   :  { %429 = dma.done.wait [#allocation4], 256  }
 0x260   :  { %430 = vsyncadd [#allocation4], 4294967040 }
 0x261   :  { %276 = vsyncpa [#allocation3], 1 }
 0x262   :  { %277 = vsyncpa [#allocation6], 1 }
 0x263   :  { %278 = vsyncpa [#allocation4], 1 }

</bundles_post_ra>
